<compile_context>
chip_gen: v5e
topology: v5e:2x2
jax: 0.10.0
libtpu: 0.0.40
codegen_flags: <defaults>
</compile_context>

<pallas_src>
import functools

import jax
import jax.numpy as jnp
from jax.experimental import pallas as pl
from jax.experimental.pallas import tpu as pltpu

IN_DIM = 5
IN_PAD = 8      # x rows padded 5 -> 8 lanes (32-byte aligned DMA rows)
HID_DIM = 128
OUT_DIM = 31
OUT_PAD = 128   # lane-dense padded output width
NEG_BIG = float(jnp.finfo(jnp.float32).min)  # fc3 bias pad: can never win argmax

MAX_TILE_B = 2048  # keeps per-step VMEM (~8 MiB) inside v5e's 16 MiB scoped default


def _mlp(x_ref, w1_ref, b1_ref, w2_ref, b2_ref, w3_ref, b3_ref):
    """fc1+relu -> fc2+relu -> fc3; bf16 MXU operands, f32 accumulate."""
    x = x_ref[...].astype(jnp.bfloat16)
    h1 = jnp.dot(x, w1_ref[...], preferred_element_type=jnp.float32) + b1_ref[...]
    h1 = jnp.maximum(h1, 0.0)                       # f32 elementwise (v5e VPU path)
    h2 = jnp.dot(h1.astype(jnp.bfloat16), w2_ref[...],
                 preferred_element_type=jnp.float32) + b2_ref[...]
    h2 = jnp.maximum(h2, 0.0)
    return jnp.dot(h2.astype(jnp.bfloat16), w3_ref[...],
                   preferred_element_type=jnp.float32) + b3_ref[...]


def qnet_kernel(x_ref, w1_ref, b1_ref, w2_ref, b2_ref, w3_ref, b3_ref, o_ref):
    # Lane-dense (128-wide) unmasked store of the padded Q-values.
    o_ref[...] = _mlp(x_ref, w1_ref, b1_ref, w2_ref, b2_ref, w3_ref, b3_ref)


def qnet_argmax_kernel(x_ref, w1_ref, b1_ref, w2_ref, b2_ref, w3_ref, b3_ref,
                       a_ref):
    # Greedy-action path: fuse argmax over the 31 real columns, emit 1 int32/row.
    q = _mlp(x_ref, w1_ref, b1_ref, w2_ref, b2_ref, w3_ref, b3_ref)
    col = jax.lax.broadcasted_iota(jnp.int32, q.shape, 1)
    q = jnp.where(col < OUT_DIM, q, NEG_BIG)        # padded columns can never win
    m = jnp.max(q, axis=-1, keepdims=True)
    # First index attaining the max (matches torch.argmax tie-breaking).
    a_ref[...] = jnp.min(jnp.where(q == m, col, OUT_PAD), axis=-1, keepdims=True)


def _round_up(v, m):
    return ((v + m - 1) // m) * m


def _tile_plan(batch, tb):
    """Batch tile (multiple of 16, <= MAX_TILE_B) and padded batch size."""
    tb = min(max(16, _round_up(int(tb), 16)), MAX_TILE_B)
    tile_b = min(tb, _round_up(batch, 16))
    # v7x megacore: ensure >= 2 grid steps for non-trivial batches so that
    # ("parallel",) can actually shard across both TensorCores.
    if batch >= 32 and _round_up(batch, 16) <= tile_b:
        tile_b = _round_up(pl.cdiv(batch, 2), 16)
    b_pad = _round_up(batch, tile_b)
    return tile_b, b_pad


def _run(kernel, x_pad, params, tile_b, b_pad, out_shape):
    w1, b1, w2, b2, w3p, b3p = params
    grid = (b_pad // tile_b,)

    # Weights/biases: constant index_map -> resident in VMEM across grid steps.
    const = lambda a: pl.BlockSpec(a.shape, lambda i: (0,) * a.ndim)

    out_cols = out_shape.shape[-1]
    out_bytes = b_pad * out_cols * jnp.dtype(out_shape.dtype).itemsize
    flops = 2 * b_pad * (IN_PAD * HID_DIM + HID_DIM * HID_DIM + HID_DIM * OUT_PAD)
    bytes_accessed = (
        int(x_pad.size) * 4
        + sum(int(p.size) * p.dtype.itemsize for p in params)
        + out_bytes)

    return pl.pallas_call(
        kernel,
        out_shape=out_shape,
        grid=grid,
        in_specs=[
            pl.BlockSpec((tile_b, IN_PAD), lambda i: (i, 0)),
            const(w1), const(b1), const(w2), const(b2), const(w3p), const(b3p),
        ],
        out_specs=pl.BlockSpec((tile_b, out_cols), lambda i: (i, 0)),
        compiler_params=pltpu.CompilerParams(
            dimension_semantics=("parallel",),      # shards batch grid on v7x
            vmem_limit_bytes=32 * 1024 * 1024),     # guards tb sweeps on v5e
        cost_estimate=pl.CostEstimate(
            flops=flops, transcendentals=0, bytes_accessed=bytes_accessed),
    )(x_pad, w1, b1, w2, b2, w3p, b3p)


@functools.partial(jax.jit, static_argnames=("tb", "return_padded"))
def qnet_forward(x, params, *, tb=1024, return_padded=False):
    """x: [B, 5] f32 -> [B, 31] f32 Q-values (or the padded [b_pad, 128] slab)."""
    B = x.shape[0]
    tile_b, b_pad = _tile_plan(B, tb)
    x_pad = jnp.pad(x, ((0, b_pad - B), (0, IN_PAD - IN_DIM)))
    out = _run(qnet_kernel, x_pad, params, tile_b, b_pad,
               jax.ShapeDtypeStruct((b_pad, OUT_PAD), jnp.float32))
    if return_padded:
        # Lane-dense slab; columns >= 31 hold NEG_BIG.  Lets the consumer fuse
        # its own slice / argmax / loss instead of paying a compacting copy here.
        return out
    return out[:B, :OUT_DIM]


@functools.partial(jax.jit, static_argnames=("tb",))
def qnet_greedy_action(x, params, *, tb=1024):
    """Greedy action (argmax over the 31 Q-values), fused in-kernel: [B] int32."""
    B = x.shape[0]
    tile_b, b_pad = _tile_plan(B, tb)
    x_pad = jnp.pad(x, ((0, b_pad - B), (0, IN_PAD - IN_DIM)))
    out = _run(qnet_argmax_kernel, x_pad, params, tile_b, b_pad,
               jax.ShapeDtypeStruct((b_pad, 1), jnp.int32))
    return out[:B, 0]


def init_params(key):
    """nn.Linear-style U(-1/sqrt(fan_in), 1/sqrt(fan_in)) init.

    Weights are stored transposed vs PyTorch ([in, out]) and in bf16 (MXU
    operands; precision policy), biases stay f32.  fc1 weight gets 3 zero input
    rows (x padded 5 -> 8 lanes); fc3 weight is zero-padded and its bias
    NEG_BIG-padded from 31 to 128 columns so the output stays lane-dense and a
    padded column can never win an argmax.
    """
    dims = [(IN_DIM, HID_DIM), (HID_DIM, HID_DIM), (HID_DIM, OUT_DIM)]
    params = []
    for layer, (fan_in, fan_out) in enumerate(dims):
        key, kw, kb = jax.random.split(key, 3)
        bound = 1.0 / jnp.sqrt(fan_in)
        w = jax.random.uniform(kw, (fan_in, fan_out), jnp.float32, -bound, bound)
        b = jax.random.uniform(kb, (1, fan_out), jnp.float32, -bound, bound)
        if layer == 0:
            w = jnp.pad(w, ((0, IN_PAD - IN_DIM), (0, 0)))
        if layer == 2:
            w = jnp.pad(w, ((0, 0), (0, OUT_PAD - OUT_DIM)))
            b = jnp.pad(b, ((0, 0), (0, OUT_PAD - OUT_DIM)),
                        constant_values=NEG_BIG)
        params += [w.astype(jnp.bfloat16), b]
    return tuple(params)


def reference_forward(x, params):
    """Pure-JAX reference replicating the kernel's bf16-operand / f32-acc math."""
    w1, b1, w2, b2, w3p, b3p = params
    xp = jnp.pad(x, ((0, 0), (0, IN_PAD - IN_DIM)))
    h1 = jnp.maximum(jnp.dot(xp.astype(jnp.bfloat16), w1,
                             preferred_element_type=jnp.float32) + b1, 0.0)
    h2 = jnp.maximum(jnp.dot(h1.astype(jnp.bfloat16), w2,
                             preferred_element_type=jnp.float32) + b2, 0.0)
    o = jnp.dot(h2.astype(jnp.bfloat16), w3p,
                preferred_element_type=jnp.float32) + b3p
    return o[:, :OUT_DIM]


if __name__ == "__main__":
    key = jax.random.PRNGKey(0)
    kx, kx2, kp = jax.random.split(key, 3)
    params = init_params(kp)

    # Small batch (action-selection style): single grid step.
    x_small = jax.random.normal(kx, (8, IN_DIM), jnp.float32)
    out_small = jax.block_until_ready(qnet_forward(x_small, params))
    ref_small = reference_forward(x_small, params)
    assert out_small.shape == (8, OUT_DIM), out_small.shape
    assert jnp.allclose(out_small, ref_small, atol=1e-3, rtol=1e-3)

    # Non-multiple-of-16 batch: exercises padding + >=2 grid steps (megacore path).
    x_big = jax.random.normal(kx2, (100, IN_DIM), jnp.float32)
    out_big = jax.block_until_ready(qnet_forward(x_big, params))
    ref_big = reference_forward(x_big, params)
    assert out_big.shape == (100, OUT_DIM), out_big.shape
    assert jnp.allclose(out_big, ref_big, atol=1e-3, rtol=1e-3)

    # Fused in-kernel argmax (greedy branch of sample_action).
    act = jax.block_until_ready(qnet_greedy_action(x_big, params))
    assert act.shape == (100,), act.shape
    assert jnp.all((act >= 0) & (act < OUT_DIM))
    rows = jnp.arange(ref_big.shape[0])
    assert jnp.all(ref_big[rows, act] >= ref_big.max(axis=-1) - 1e-3)

    # TODO(synk): sample_action's host-side epsilon coin flip (random.random /
    # random.randint) is Python control flow outside the forward pass and is
    # intentionally left on the host.
    print("KERNEL_OK")
</pallas_src>

<mosaic_0001>
module attributes {stable_mosaic.version = 11 : i64} {
  func.func @qnet_kernel(%arg0: i32, %arg1: memref<16x8xf32, #tpu.memory_space<vmem>>, %arg2: memref<8x128xbf16, #tpu.memory_space<vmem>>, %arg3: memref<1x128xf32, #tpu.memory_space<vmem>>, %arg4: memref<128x128xbf16, #tpu.memory_space<vmem>>, %arg5: memref<1x128xf32, #tpu.memory_space<vmem>>, %arg6: memref<128x128xbf16, #tpu.memory_space<vmem>>, %arg7: memref<1x128xf32, #tpu.memory_space<vmem>>, %arg8: memref<16x128xf32, #tpu.memory_space<vmem>>) attributes {dimension_semantics = [#tpu.dimension_semantics<parallel>], iteration_bounds = array<i64: 1>, scalar_prefetch = 0 : i64, scratch_operands = 0 : i64, tpu.core_type = #tpu.core_type<tc>, window_params = [{transform_indices = @transform_0, window_bounds = array<i64: 16, 8>}, {pipeline_mode = #tpu.pipeline_mode<synchronous>, transform_indices = @transform_1, window_bounds = array<i64: 8, 128>}, {pipeline_mode = #tpu.pipeline_mode<synchronous>, transform_indices = @transform_2, window_bounds = array<i64: 1, 128>}, {pipeline_mode = #tpu.pipeline_mode<synchronous>, transform_indices = @transform_3, window_bounds = array<i64: 128, 128>}, {pipeline_mode = #tpu.pipeline_mode<synchronous>, transform_indices = @transform_4, window_bounds = array<i64: 1, 128>}, {pipeline_mode = #tpu.pipeline_mode<synchronous>, transform_indices = @transform_5, window_bounds = array<i64: 128, 128>}, {pipeline_mode = #tpu.pipeline_mode<synchronous>, transform_indices = @transform_6, window_bounds = array<i64: 1, 128>}, {transform_indices = @transform_7, window_bounds = array<i64: 16, 128>}]} {
    %c0 = arith.constant 0 : index
    %c0_0 = arith.constant 0 : index
    %0 = vector.load %arg1[%c0, %c0_0] : memref<16x8xf32, #tpu.memory_space<vmem>>, vector<16x8xf32>
    %1 = arith.truncf %0 : vector<16x8xf32> to vector<16x8xbf16>
    %c0_1 = arith.constant 0 : index
    %c0_2 = arith.constant 0 : index
    %2 = vector.load %arg2[%c0_1, %c0_2] : memref<8x128xbf16, #tpu.memory_space<vmem>>, vector<8x128xbf16>
    %cst = arith.constant dense<0.000000e+00> : vector<16x128xf32>
    %3 = tpu.matmul %1, %2, %cst {dimension_numbers = #tpu.dot_dimension_numbers<[1], [0], [0], [1], [0, 0, 1, 1], [], []>} : vector<16x8xbf16>, vector<8x128xbf16>, vector<16x128xf32> -> vector<16x128xf32>
    %c0_3 = arith.constant 0 : index
    %c0_4 = arith.constant 0 : index
    %4 = vector.load %arg3[%c0_3, %c0_4] : memref<1x128xf32, #tpu.memory_space<vmem>>, vector<1x128xf32>
    %5 = vector.broadcast %4 : vector<1x128xf32> to vector<16x128xf32>
    %6 = arith.addf %3, %5 : vector<16x128xf32>
    %cst_5 = arith.constant 0.000000e+00 : f32
    %7 = vector.broadcast %cst_5 : f32 to vector<16x128xf32>
    %8 = arith.maximumf %6, %7 : vector<16x128xf32>
    %9 = arith.truncf %8 : vector<16x128xf32> to vector<16x128xbf16>
    %c0_6 = arith.constant 0 : index
    %c0_7 = arith.constant 0 : index
    %10 = vector.load %arg4[%c0_6, %c0_7] : memref<128x128xbf16, #tpu.memory_space<vmem>>, vector<128x128xbf16>
    %cst_8 = arith.constant dense<0.000000e+00> : vector<16x128xf32>
    %11 = tpu.matmul %9, %10, %cst_8 {dimension_numbers = #tpu.dot_dimension_numbers<[1], [0], [0], [1], [0, 0, 1, 1], [], []>} : vector<16x128xbf16>, vector<128x128xbf16>, vector<16x128xf32> -> vector<16x128xf32>
    %c0_9 = arith.constant 0 : index
    %c0_10 = arith.constant 0 : index
    %12 = vector.load %arg5[%c0_9, %c0_10] : memref<1x128xf32, #tpu.memory_space<vmem>>, vector<1x128xf32>
    %13 = vector.broadcast %12 : vector<1x128xf32> to vector<16x128xf32>
    %14 = arith.addf %11, %13 : vector<16x128xf32>
    %cst_11 = arith.constant 0.000000e+00 : f32
    %15 = vector.broadcast %cst_11 : f32 to vector<16x128xf32>
    %16 = arith.maximumf %14, %15 : vector<16x128xf32>
    %17 = arith.truncf %16 : vector<16x128xf32> to vector<16x128xbf16>
    %c0_12 = arith.constant 0 : index
    %c0_13 = arith.constant 0 : index
    %18 = vector.load %arg6[%c0_12, %c0_13] : memref<128x128xbf16, #tpu.memory_space<vmem>>, vector<128x128xbf16>
    %cst_14 = arith.constant dense<0.000000e+00> : vector<16x128xf32>
    %19 = tpu.matmul %17, %18, %cst_14 {dimension_numbers = #tpu.dot_dimension_numbers<[1], [0], [0], [1], [0, 0, 1, 1], [], []>} : vector<16x128xbf16>, vector<128x128xbf16>, vector<16x128xf32> -> vector<16x128xf32>
    %c0_15 = arith.constant 0 : index
    %c0_16 = arith.constant 0 : index
    %20 = vector.load %arg7[%c0_15, %c0_16] : memref<1x128xf32, #tpu.memory_space<vmem>>, vector<1x128xf32>
    %21 = vector.broadcast %20 : vector<1x128xf32> to vector<16x128xf32>
    %22 = arith.addf %19, %21 : vector<16x128xf32>
    %c0_17 = arith.constant 0 : index
    %c0_18 = arith.constant 0 : index
    %23 = vector.load %arg8[%c0_17, %c0_18] : memref<16x128xf32, #tpu.memory_space<vmem>>, vector<16x128xf32>
    tpu.vector_store %arg8[%c0_17, %c0_18], %22 {strides = array<i32>} : memref<16x128xf32, #tpu.memory_space<vmem>>, vector<16x128xf32>,
    return
  }
  func.func @transform_0(%arg0: i32) -> (i32, i32) {
    %c0_i32 = arith.constant 0 : i32
    %c0_i32_0 = arith.constant 0 : i32
    return %arg0, %c0_i32 : i32, i32
  }
  func.func @transform_1(%arg0: i32) -> (i32, i32) {
    %c0_i32 = arith.constant 0 : i32
    %c0_i32_0 = arith.constant 0 : i32
    %c0_i32_1 = arith.constant 0 : i32
    return %c0_i32, %c0_i32_0 : i32, i32
  }
  func.func @transform_2(%arg0: i32) -> (i32, i32) {
    %c0_i32 = arith.constant 0 : i32
    %c0_i32_0 = arith.constant 0 : i32
    %c0_i32_1 = arith.constant 0 : i32
    return %c0_i32, %c0_i32_0 : i32, i32
  }
  func.func @transform_3(%arg0: i32) -> (i32, i32) {
    %c0_i32 = arith.constant 0 : i32
    %c0_i32_0 = arith.constant 0 : i32
    %c0_i32_1 = arith.constant 0 : i32
    return %c0_i32, %c0_i32_0 : i32, i32
  }
  func.func @transform_4(%arg0: i32) -> (i32, i32) {
    %c0_i32 = arith.constant 0 : i32
    %c0_i32_0 = arith.constant 0 : i32
    %c0_i32_1 = arith.constant 0 : i32
    return %c0_i32, %c0_i32_0 : i32, i32
  }
  func.func @transform_5(%arg0: i32) -> (i32, i32) {
    %c0_i32 = arith.constant 0 : i32
    %c0_i32_0 = arith.constant 0 : i32
    %c0_i32_1 = arith.constant 0 : i32
    return %c0_i32, %c0_i32_0 : i32, i32
  }
  func.func @transform_6(%arg0: i32) -> (i32, i32) {
    %c0_i32 = arith.constant 0 : i32
    %c0_i32_0 = arith.constant 0 : i32
    %c0_i32_1 = arith.constant 0 : i32
    return %c0_i32, %c0_i32_0 : i32, i32
  }
  func.func @transform_7(%arg0: i32) -> (i32, i32) {
    %c0_i32 = arith.constant 0 : i32
    %c0_i32_0 = arith.constant 0 : i32
    return %arg0, %c0_i32 : i32, i32
  }
}

</mosaic_0001>

<bundles_post_ra>
// kernel: qnet_forward.1
= control target key start
LH: loop header
LB: loop body
LE: loop exit
PB: predicated region body
PF: predicated region fallthrough
CT: control target
= control target key end

     0   :  { %12 = vsyncpa [#allocation3], 0  ;;  %s481_s0 = inlined_call_operand.vmem [shape: f32[16,8], index: 0, kind: input, shape index: {}]   ;;  %s482_s1 = inlined_call_operand.vmem [shape: bf16[8,128], index: 1, kind: input, shape index: {}]   ;;  %s483_s2 = inlined_call_operand.vmem [shape: f32[1,128], index: 2, kind: input, shape index: {}]   ;;  %s484_s3 = inlined_call_operand.hbm [shape: bf16[128,128], index: 3, kind: input, shape index: {}]   ;;  %s485_s4 = inlined_call_operand.vmem [shape: f32[1,128], index: 4, kind: input, shape index: {}]   ;;  %s486_s5 = inlined_call_operand.hbm [shape: bf16[128,128], index: 5, kind: input, shape index: {}]   ;;  %s487_s6 = inlined_call_operand.vmem [shape: f32[1,128], index: 6, kind: input, shape index: {}]   ;;  %s488_s7 = inlined_call_operand.vmem [shape: f32[16,128], index: 7, kind: output, shape index: {}]  }
   0x1   :  { %s24_s26 = sshll.u32 %s484_s3, 4  ;;  %s25_s26 = int_to_ptr.hbm [resolvable:$true] %s24_s26 }
   0x2   :  { %13 = vsyncpa [#allocation5], 0  ;;  %s407_s27 = smov [#allocation2]   ;;  %s39_s8 = sshll.u32 %s486_s5, 4  ;;  %s40_s8 = int_to_ptr.hbm [resolvable:$true] %s39_s8 }
   0x3   :  { %s26_s28 = sshll.u32 %s407_s27, 4  ;;  %s408_s9 = smov 64   ;;  %s27_s28 = int_to_ptr.vmem [resolvable:$true] %s26_s28 }
   0x4   :  { %s409_s10 = smov 4   ;;  %s410_s11 = smov [#allocation4]  }
   0x5   :  { %32 = dma.hbm_to_vmem [thread:$0]  %s25_s26, 1024, %s27_s28, [#allocation3], %s408_s9, %s408_s9, %s409_s10  }
   0x6   :  { %s41_s12 = sshll.u32 %s410_s11, 4  ;;  %s42_s12 = int_to_ptr.vmem [resolvable:$true] %s41_s12 }
   0x7   :  { %47 = dma.hbm_to_vmem [thread:$0]  %s40_s8, 1024, %s42_s12, [#allocation5], %s408_s9, %s408_s9, %s409_s10  }
   0x8   :  { %403 = dma.done.wait [#allocation3], 1024  }
   0x9   :  { %404 = vsyncadd [#allocation3], 4294966272 }
   0xa   :  { %405 = dma.done.wait [#allocation5], 1024  }
   0xb   :  { %406 = vsyncadd [#allocation5], 4294966272  ;;  %vm71_vm0 = vcmask 1043456   ;;  %v62_v0 = vld [vmem:[%s482_s1] sm:$0xf]  ;;  %v60_v2 = vld [vmem:[%s481_s0 + $0x8] sm:$0xff] }
   0xc   :  { %v59_v1 = vld [vmem:[%s481_s0] sm:$0xff]  ;;  %v73_v3 = vsel %vm71_vm0, %v62_v0, 0  ;;  %v339_v5 = vld [vmem:[#allocation2 + $0x38] sm:$0xff]  ;;  %vm67_vm1 = vcmask 64512   ;;  %v338_v6 = vld [vmem:[#allocation2 + $0x30] sm:$0xff] }
   0xd   :  { %v61_v4 = vpack.c.bf16 %v60_v2, %v59_v1  ;;  %82 = vmatpush.bf16.msra.mxu0 %v73_v3  ;;  %160 = vmatpush.bf16.msra.mxu1 %v339_v5  ;;  %v337_v7 = vld [vmem:[#allocation2 + $0x28] sm:$0xff]  ;;  %v336_v8 = vld [vmem:[#allocation2 + $0x20] sm:$0xff]  ;;  %v335_v9 = vld [vmem:[#allocation2 + $0x18] sm:$0xff] }
   0xe   :  { %v334_v10 = vld [vmem:[#allocation2 + $0x10] sm:$0xff]  ;;  %v333_v11 = vld [vmem:[#allocation2 + $0x8] sm:$0xff]  ;;  %v332_v12 = vld [vmem:[#allocation2] sm:$0xff] }
   0xf   :  { %v347_v13 = vld [vmem:[#allocation4 + $0x38] sm:$0xff]  ;;  %v346_v14 = vld [vmem:[#allocation4 + $0x30] sm:$0xff]  ;;  %v345_v15 = vld [vmem:[#allocation4 + $0x28] sm:$0xff] }
  0x10   :  { %267 = vmatmul.msk.bf16.vlgmr.msra.gmra.mxu0 %vm67_vm1, %v61_v4  ;;  %245 = vmatpush.bf16.msra.mxu2 %v347_v13  ;;  %v344_v16 = vld [vmem:[#allocation4 + $0x20] sm:$0xff]  ;;  %v343_v25 = vld [vmem:[#allocation4 + $0x18] sm:$0xff]  ;;  %v342_v26 = vld [vmem:[#allocation4 + $0x10] sm:$0xff] }
  0x11   :  { %161 = vmatpush.bf16.msra.mxu1 %v338_v6  ;;  %v352_v18 = vld [vmem:[%s483_s2] ss:$0 sm:$0xff]  ;;  %v341_v27 = vld [vmem:[#allocation4 + $0x8] sm:$0xff] }
  0x12   :  { %v340_v28 = vld [vmem:[#allocation4] sm:$0xff] }
  0x13   :  { %v353_v30 = vld [vmem:[%s485_s4] ss:$0 sm:$0xff] }
  0x14   :  { %246 = vmatpush.bf16.msra.mxu2 %v346_v14  ;;  %v354_v37 = vld [vmem:[%s487_s6] ss:$0 sm:$0xff] }
  0x15   :  { %162 = vmatpush.bf16.msra.mxu1 %v337_v7 }
  0x18   :  { %247 = vmatpush.bf16.msra.mxu2 %v345_v15 }
  0x19   :  { %163 = vmatpush.bf16.msra.mxu1 %v336_v8 }
  0x1c   :  { %248 = vmatpush.bf16.msra.mxu2 %v344_v16 }
  0x1d   :  { %164 = vmatpush.bf16.msra.mxu1 %v335_v9 }
  0x20   :  { %249 = vmatpush.bf16.msra.mxu2 %v343_v25 }
  0x21   :  { %165 = vmatpush.bf16.msra.mxu1 %v334_v10 }
  0x24   :  { %250 = vmatpush.bf16.msra.mxu2 %v342_v26 }
  0x25   :  { %166 = vmatpush.bf16.msra.mxu1 %v333_v11 }
  0x28   :  { %251 = vmatpush.bf16.msra.mxu2 %v341_v27 }
  0x29   :  { %167 = vmatpush.bf16.msra.mxu1 %v332_v12 }
  0x2c   :  { %252 = vmatpush.bf16.msra.mxu2 %v340_v28 }
  0x8d   :  { %v84_v17 = vpop.f32.mrf.mxu0 }
  0x8e   :  { %v85_v19 = vadd.f32 %v352_v18, %v84_v17 }
  0x90   :  { %v89_v22 = vmax.f32 %v85_v19, 0.0 }
  0x95   :  { %v86_v20 = vpop.f32.mrf.mxu0 }
  0x96   :  { %v87_v21 = vadd.f32 %v352_v18, %v86_v20 }
  0x98   :  { %v90_v23 = vmax.f32 %v87_v21, 0.0 }
  0x9a   :  { %v91_v24 = vpack.c.bf16 %v90_v23, %v89_v22 }
  0x9c   :  { %168 = vmatmul.bf16.vlgmr.msra.gmra.mxu1 %v91_v24 }
 0x119   :  { %v169_v29 = vpop.f32.mrf.mxu1 }
 0x11a   :  { %v170_v31 = vadd.f32 %v353_v30, %v169_v29 }
 0x11c   :  { %v174_v34 = vmax.f32 %v170_v31, 0.0 }
 0x121   :  { %v171_v32 = vpop.f32.mrf.mxu1 }
 0x122   :  { %v172_v33 = vadd.f32 %v353_v30, %v171_v32 }
 0x124   :  { %v175_v35 = vmax.f32 %v172_v33, 0.0 }
 0x126   :  { %v176_v36 = vpack.c.bf16 %v175_v35, %v174_v34 }
 0x128   :  { %253 = vmatmul.bf16.vlgmr.msra.gmra.mxu2 %v176_v36 }
 0x1ab   :  { %v254_v38 = vpop.f32.mrf.mxu2 }
 0x1ac   :  { %v255_v39 = vadd.f32 %v354_v37, %v254_v38 }
 0x1ae   :  { %259 = vst [vmem:[%s488_s7] sm:$0xff] %v255_v39 }
 0x1b3   :  { %v256_v40 = vpop.f32.mrf.mxu2 }
 0x1b4   :  { %v257_v41 = vadd.f32 %v354_v37, %v256_v40 }
 0x1b6   :  { %260 = vst [vmem:[%s488_s7 + $0x8] sm:$0xff] %v257_v41 }
 0x1b7   :  { %265 = vsyncpa [#allocation3], 1 }
 0x1b8   :  { %266 = vsyncpa [#allocation5], 1 }

</bundles_post_ra>
